<compile_context>
chip_gen: v7x
topology: tpu7x:2x2x1
jax: 0.10.0
libtpu: 0.0.40
codegen_flags: <defaults>
</compile_context>

<pallas_src>
import functools

import jax
import jax.numpy as jnp
from jax import lax
from jax.experimental import pallas as pl
from jax.experimental.pallas import tpu as pltpu


def _round_up(x: int, m: int) -> int:
    return (x + m - 1) // m * m


def _pick_tile(dim: int, want: int, align: int) -> int:
    """Largest tile <= want; if the whole dim fits, use the full dim
    (block-shape == full array dim is exempt from the (8,128) rule)."""
    if dim <= want:
        return dim
    return max(align, (want // align) * align)


def _linear_bias_kernel_1k(x_ref, w_ref, b_ref, o_ref):
    # Single K step: whole reduction dim in one block, no scratch accumulator.
    acc = jnp.dot(x_ref[...], w_ref[...], preferred_element_type=jnp.float32)
    o_ref[...] = (acc + b_ref[...].astype(jnp.float32)).astype(o_ref.dtype)


def _make_linear_bias_kernel_mk(k_rem: int, tk: int):
    """K-tiled kernel. If k_rem != 0 the last K tile is masked in-kernel, so
    the host never materializes a K-padded copy of the activations."""

    def kernel(x_ref, w_ref, b_ref, o_ref, acc_ref):
        k = pl.program_id(2)
        nk = pl.num_programs(2)

        @pl.when(k == 0)
        def _():
            # Init the f32 accumulator with the broadcast bias; the last-K
            # epilogue is then just cast + store.
            acc_ref[...] = jnp.broadcast_to(
                b_ref[...].astype(jnp.float32), acc_ref.shape)

        x = x_ref[...]
        w = w_ref[...]
        if k_rem:
            # Zero the out-of-range K tail (uninitialized VMEM garbage must
            # not be accumulated into valid outputs).
            valid = jnp.where(k == nk - 1, k_rem, tk)
            col = lax.broadcasted_iota(jnp.int32, x.shape, 1)
            row = lax.broadcasted_iota(jnp.int32, w.shape, 0)
            x = jnp.where(col < valid, x, jnp.zeros_like(x))
            w = jnp.where(row < valid, w, jnp.zeros_like(w))

        acc_ref[...] += jnp.dot(x, w, preferred_element_type=jnp.float32)

        @pl.when(k == nk - 1)
        def _():
            o_ref[...] = acc_ref[...].astype(o_ref.dtype)

    return kernel


def _linear_pallas(x_flat, w_t, b, *, tm, tn, tk, k_full_max, out_dtype):
    """y = x_flat @ w_t + b   with x_flat: (M, F), w_t: (F, N), b: (N,)."""
    M, F = x_flat.shape
    F2, N = w_t.shape
    assert F == F2, "weight inner dim must match input features"
    b2 = b.reshape(1, N)

    in_dt = x_flat.dtype
    sub = max(8, 32 // jnp.dtype(in_dt).itemsize)  # sublane packing per dtype

    tm_eff = _pick_tile(M, tm, sub)
    tn_eff = _pick_tile(N, tn, 128)

    # v7x has 2 TensorCores: make sure at least one "parallel" axis has >= 2
    # blocks so work can be sharded across both cores. Harmless on v5e/v6e.
    if pl.cdiv(M, tm_eff) == 1 and pl.cdiv(N, tn_eff) == 1:
        split_done = False
        if M > sub:
            half = _round_up(-(-M // 2), sub)
            if half < M:
                tm_eff = half
                split_done = True
        if not split_done and N > 128:
            half = _round_up(-(-N // 2), 128)
            if half < N:
                tn_eff = half

    grid_m = pl.cdiv(M, tm_eff)
    grid_n = pl.cdiv(N, tn_eff)

    bytes_in = jnp.dtype(in_dt).itemsize
    bytes_w = jnp.dtype(w_t.dtype).itemsize
    bytes_b = jnp.dtype(b2.dtype).itemsize
    bytes_out = jnp.dtype(out_dtype).itemsize

    cost = pl.CostEstimate(
        flops=2 * M * F * N,
        transcendentals=0,
        bytes_accessed=(M * F * bytes_in + F * N * bytes_w
                        + N * bytes_b + M * N * bytes_out),
    )

    single_k = F <= max(k_full_max, 128)
    if single_k:
        k_blk = F  # whole reduction dim as one block (full-dim exemption)
        grid = (grid_m, grid_n)
        in_specs = [
            pl.BlockSpec((tm_eff, k_blk), lambda i, j: (i, 0)),
            pl.BlockSpec((k_blk, tn_eff), lambda i, j: (0, j)),
            pl.BlockSpec((1, tn_eff), lambda i, j: (0, j)),
        ]
        out_specs = pl.BlockSpec((tm_eff, tn_eff), lambda i, j: (i, j))
        scratch = []
        kernel = _linear_bias_kernel_1k
        semantics = ("parallel", "parallel")
        acc_bytes = 0
    else:
        tk_eff = max(128, (min(tk, F) // 128) * 128)   # lane-aligned K tile
        k_rem = F % tk_eff
        k_blk = tk_eff
        grid = (grid_m, grid_n, pl.cdiv(F, tk_eff))
        in_specs = [
            pl.BlockSpec((tm_eff, tk_eff), lambda i, j, k: (i, k)),
            pl.BlockSpec((tk_eff, tn_eff), lambda i, j, k: (k, j)),
            pl.BlockSpec((1, tn_eff), lambda i, j, k: (0, j)),
        ]
        out_specs = pl.BlockSpec((tm_eff, tn_eff), lambda i, j, k: (i, j))
        scratch = [pltpu.VMEM((tm_eff, tn_eff), jnp.float32)]
        kernel = _make_linear_bias_kernel_mk(k_rem, tk_eff)
        semantics = ("parallel", "parallel", "arbitrary")
        acc_bytes = tm_eff * tn_eff * 4

    # Rough double-buffered VMEM footprint; only raise the scoped limit when
    # the plan needs it, with a generation-aware ceiling (v7x: 64 MiB phys).
    vmem_est = (
        2 * (tm_eff * k_blk * bytes_in
             + k_blk * tn_eff * bytes_w
             + tn_eff * bytes_b
             + tm_eff * tn_eff * bytes_out)
        + acc_bytes
    )
    try:
        vmem_cap = int(pltpu.get_tpu_info().vmem_capacity_bytes)
    except Exception:
        vmem_cap = 64 * 1024 * 1024  # conservative: safe on all generations
    ceiling = min(vmem_cap * 7 // 8, 96 * 1024 * 1024)
    vmem_limit = None
    if vmem_est > 12 * 1024 * 1024:  # v5e default scoped limit is 16 MiB
        vmem_limit = int(min(max(vmem_est * 3 // 2, 16 * 1024 * 1024), ceiling))

    return pl.pallas_call(
        kernel,
        out_shape=jax.ShapeDtypeStruct((M, N), out_dtype),
        grid_spec=pltpu.PrefetchScalarGridSpec(
            num_scalar_prefetch=0,
            grid=grid,
            in_specs=in_specs,
            out_specs=out_specs,
            scratch_shapes=scratch,
        ),
        compiler_params=pltpu.CompilerParams(
            dimension_semantics=semantics,
            vmem_limit_bytes=vmem_limit,
        ),
        cost_estimate=cost,
    )(x_flat, w_t, b2)


def time_distributed_linear(x, w_t, b, *, batch_first=True,
                            tm=512, tn=512, tk=1024, k_full_max=2048,
                            compute_dtype=None):
    """TimeDistributed(nn.Linear(F->N)) forward.

    x    : (..., F)  (rank<=2 applies the Linear directly, like the module)
    w_t  : (F, N)    -- transpose of the PyTorch Linear weight (N, F)
    b    : (N,)
    compute_dtype: None -> compute in the input dtype (exact precision
    contract). Passing jnp.bfloat16 is an explicit opt-in that trades one
    cast pass over x for halved in-kernel HBM reads.
    """
    N = w_t.shape[1]
    out_dtype = x.dtype

    if compute_dtype is not None and compute_dtype != x.dtype:
        x = x.astype(compute_dtype)
        w_t = w_t.astype(compute_dtype)

    lin = functools.partial(_linear_pallas, w_t=w_t, b=b, tm=tm, tn=tn, tk=tk,
                            k_full_max=k_full_max, out_dtype=out_dtype)

    if x.ndim <= 2:  # PyTorch: `if len(x.size()) <= 2: return self.module(x)`
        x2 = x.reshape(-1, x.shape[-1])
        return lin(x2).reshape(x.shape[:-1] + (N,))

    F = x.shape[-1]
    x_flat = x.reshape(-1, F)                      # x.contiguous().view(-1, F)
    y_flat = lin(x_flat)
    if batch_first:
        return y_flat.reshape(x.shape[0], -1, N)   # y.view(B, -1, N)
    else:
        return y_flat.reshape(-1, x.shape[1], N)   # y.view(-1, T, N)


if __name__ == "__main__":
    key = jax.random.PRNGKey(0)
    k_x, k_w, k_b = jax.random.split(key, 3)

    B, T, F, N = 2, 8, 32, 64  # batch=2, seq=8, in_features=32, out_features=64

    x = jax.random.normal(k_x, (B, T, F), dtype=jnp.float32)
    # PyTorch stores Linear weight as (N, F); we pass W^T = (F, N).
    w = jax.random.normal(k_w, (N, F), dtype=jnp.float32) * 0.05
    b = jax.random.normal(k_b, (N,), dtype=jnp.float32) * 0.05
    w_t = w.T

    y = time_distributed_linear(x, w_t, b, batch_first=True)
    y = jax.block_until_ready(y)

    # Reference: exact TimeDistributed(Linear) semantics in plain JAX.
    y_ref = (x.reshape(-1, F) @ w_t + b).reshape(B, T, N)
    assert y.shape == (B, T, N)
    # Compute is f32 end-to-end now; tolerance only covers the TPU's default
    # MXU precision for f32 matmuls (which may use bf16 passes).
    assert jnp.allclose(y, y_ref, atol=2e-2, rtol=2e-2), float(
        jnp.max(jnp.abs(y - y_ref))
    )

    print("KERNEL_OK")
</pallas_src>

<mosaic_0001>
module attributes {stable_mosaic.version = 11 : i64} {
  func.func @_linear_bias_kernel_1k(%arg0: i32, %arg1: i32, %arg2: memref<8x32xf32, #tpu.memory_space<vmem>>, %arg3: memref<32x64xf32, #tpu.memory_space<vmem>>, %arg4: memref<1x64xf32, #tpu.memory_space<vmem>>, %arg5: memref<8x64xf32, #tpu.memory_space<vmem>>) attributes {dimension_semantics = [#tpu.dimension_semantics<parallel>, #tpu.dimension_semantics<parallel>], iteration_bounds = array<i64: 2, 1>, scalar_prefetch = 0 : i64, scratch_operands = 0 : i64, tpu.core_type = #tpu.core_type<tc>, window_params = [{transform_indices = @transform_0, window_bounds = array<i64: 8, 32>}, {transform_indices = @transform_1, window_bounds = array<i64: 32, 64>}, {transform_indices = @transform_2, window_bounds = array<i64: 1, 64>}, {transform_indices = @transform_3, window_bounds = array<i64: 8, 64>}]} {
    %c0 = arith.constant 0 : index
    %c0_0 = arith.constant 0 : index
    %0 = vector.load %arg2[%c0, %c0_0] : memref<8x32xf32, #tpu.memory_space<vmem>>, vector<8x32xf32>
    %c0_1 = arith.constant 0 : index
    %c0_2 = arith.constant 0 : index
    %1 = vector.load %arg3[%c0_1, %c0_2] : memref<32x64xf32, #tpu.memory_space<vmem>>, vector<32x64xf32>
    %cst = arith.constant dense<0.000000e+00> : vector<8x64xf32>
    %2 = tpu.matmul %0, %1, %cst {dimension_numbers = #tpu.dot_dimension_numbers<[1], [0], [0], [1], [0, 0, 1, 1], [], []>} : vector<8x32xf32>, vector<32x64xf32>, vector<8x64xf32> -> vector<8x64xf32>
    %c0_3 = arith.constant 0 : index
    %c0_4 = arith.constant 0 : index
    %3 = vector.load %arg4[%c0_3, %c0_4] : memref<1x64xf32, #tpu.memory_space<vmem>>, vector<1x64xf32>
    %4 = vector.broadcast %3 : vector<1x64xf32> to vector<8x64xf32>
    %5 = arith.addf %2, %4 : vector<8x64xf32>
    %c0_5 = arith.constant 0 : index
    %c0_6 = arith.constant 0 : index
    %6 = vector.load %arg5[%c0_5, %c0_6] : memref<8x64xf32, #tpu.memory_space<vmem>>, vector<8x64xf32>
    tpu.vector_store %arg5[%c0_5, %c0_6], %5 {strides = array<i32>} : memref<8x64xf32, #tpu.memory_space<vmem>>, vector<8x64xf32>,
    return
  }
  func.func @transform_0(%arg0: i32, %arg1: i32) -> (i32, i32) {
    %c0_i32 = arith.constant 0 : i32
    %c0_i32_0 = arith.constant 0 : i32
    return %arg0, %c0_i32 : i32, i32
  }
  func.func @transform_1(%arg0: i32, %arg1: i32) -> (i32, i32) {
    %c0_i32 = arith.constant 0 : i32
    %c0_i32_0 = arith.constant 0 : i32
    return %c0_i32, %arg1 : i32, i32
  }
  func.func @transform_2(%arg0: i32, %arg1: i32) -> (i32, i32) {
    %c0_i32 = arith.constant 0 : i32
    %c0_i32_0 = arith.constant 0 : i32
    return %c0_i32, %arg1 : i32, i32
  }
  func.func @transform_3(%arg0: i32, %arg1: i32) -> (i32, i32) {
    %c0_i32 = arith.constant 0 : i32
    return %arg0, %arg1 : i32, i32
  }
}

</mosaic_0001>

<bundles_post_ra>
// kernel: tpu_custom_call.1
= control target key start
LH: loop header
LB: loop body
LE: loop exit
PB: predicated region body
PF: predicated region fallthrough
CT: control target
= control target key end

     0   :  { %8 = vsyncpa [#allocation3], 0  ;;  %s951_s0 = inlined_call_operand.hbm [shape: f32[16,32], index: 0, kind: input, shape index: {}]   ;;  %s952_s1 = inlined_call_operand.hbm [shape: f32[32,64], index: 1, kind: input, shape index: {}]   ;;  %s953_s2 = inlined_call_operand.vmem [shape: f32[1,64], index: 2, kind: input, shape index: {}]   ;;  %s954_s3 = inlined_call_operand.hbm [shape: f32[16,64], index: 3, kind: output, shape index: {}]  }
   0x1   :  { %10 = vsyncpa [#allocation3 + $0x1], 0 }
   0x2   :  { %11 = vsyncpa [#allocation6], 0 }
   0x3   :  { %12 = vsyncpa [#allocation4], 0 }
   0x4   :  { %14 = vsyncpa [#allocation4 + $0x1], 0  ;;  %s734_s12 = smov 0   ;;  %s736_s13 = smov 0  }
   0x5   :  { %s738_s14 = smov 0   ;;  %s740_s15 = smov 0  }
   0x6   :  { %s742_s16 = smov 0   ;;  %s744_s17 = smov 0  }
   0x7 LB: > { %s442_s18 = sadd.s32 4294967295, %s704_s17   ;;  %s443_s19 = sadd.s32 4294967294, %s704_s17   ;;  %s704_s17 = sphi %s744_s17, %s20_s17   ;;  %s700_s16 = sphi %s742_s16, %s978_s16   ;;  %s696_s15 = sphi %s740_s15, %s977_s15   ;;  %s692_s14 = sphi %s738_s14, %s976_s14   ;;  %s688_s13 = sphi %s736_s13, %s975_s13   ;;  %s684_s12 = sphi %s734_s12, %s974_s12  }
   0x8   : > { %p52_p0 = scmp.ne.s32.totalorder %s688_s13, %s684_s12  ;;  %p768_p1 = scmp.eq.s32.totalorder %s442_s18, 0 }
   0x9   : > { %p772_p2 = scmp.eq.s32.totalorder %s442_s18, 1  ;;  %p136_p3 = scmp.eq.s32.totalorder %s443_s19, 1 }
   0xa   : > { %s959_s20 = scalar_select %p768_p1, 1, 0 }
   0xb   : > { %s960_s21 = scalar_select %p772_p2, 1, 0 }
   0xc   : > { %p778_p4 = por %p768_p1, %p52_p0  ;;  %p444_p5 = scmp.ge.s32.totalorder %s704_s17, 1 }
   0xd   : > { %p783_p6 = por %p136_p3, %p52_p0  ;;  %p143_p7 = scmp.lt.s32.totalorder %s704_s17, 3 }
   0xe   : > { %s961_s22 = scalar_select %p778_p4, 1, 0 }
   0xf   : > { %s962_s23 = scalar_select %p783_p6, 1, 0 }
  0x10   : > { %p788_p8 = pnand %p444_p5, %p143_p7  ;;  %s706_s25 = smov [#allocation5]  }
  0x11   : > { %s157_s26 = sshll.u32 %s706_s25, 4  ;;  %s32_s28 = sadd.s32 1, %s700_s16  ;;  %s158_s26 = int_to_ptr.vmem [resolvable:$true] %s157_s26 }
  0x12   : > { %s963_s24 = scalar_select %p788_p8, 1, 0 }
  0x13   : > { %p490_p9 = pneg %p788_p8  ;;  %s560_s4 = scalar_lea.hbm %s952_s1, 512 }
  0x14   : > { %p561_p12 = scmp.ne.s32.totalorder %s952_s1, %s560_s4  ;;  %p567_p5 = scmp.lt.u32.totalorder %s560_s4, %s952_s1 }
  0x15   : > { %p797_p11 = pnand %p490_p9, %p768_p1 }
  0x17   : > { %p562_p13 = pneg %p797_p11 }
  0x19   : > { %p563_p0 = pnand %p562_p13, %p561_p12 }
  0x1b   : > { %p564_p3 = pneg %p563_p0 }
  0x1d   : > { %p569_p7 = pnand %p567_p5, %p564_p3 }
  0x1f   : > { %572 = shalt.err (!%p569_p7)
}
  0x20   : > { %s573_s9 = scalar_lea.vmem %s158_s26, 512  ;;  %p581_p1 = scmp.lt.s32.totalorder %s158_s26, %s158_s26 }
  0x21   : > { %p574_p9 = scmp.ne.s32.totalorder %s158_s26, %s573_s9  ;;  %p582_p4 = scmp.lt.s32.totalorder %s573_s9, %s573_s9 }
  0x23   : > { %p576_p10 = pnand %p574_p9, %p562_p13  ;;  %p583_p8 = por %p582_p4, %p581_p1 }
  0x25   : > { %p577_p6 = pneg %p576_p10 }
  0x27   : > { %p584_p2 = pnand %p583_p8, %p577_p6 }
  0x29   : > { %587 = shalt.err (!%p584_p2)
}
  0x2a   : > { %s707_s10 = smov 128   ;;  %s708_s11 = smov 8  }
  0x2b   : > { %493 = dma.hbm_to_vmem [thread:$0]  (!%p797_p11), %s952_s1, 512, %s158_s26, [#allocation6], %s707_s10, %s707_s10, %s708_s11  }
  0x2c   : > { %p34_p1 = scmp.ge.s32.totalorder %s32_s28, 2  ;;  %s39_s25 = sadd.s32 1, %s692_s14 }
  0x2d   : > { %p46_p2 = scmp.ne.s32.totalorder %s692_s14, %s688_s13  ;;  %p47_p4 = scmp.eq.s32.totalorder %s704_s17, 0 }
  0x2e   : > { %s980_s28 = smov (%p34_p1, %s32_s28), 0  ;;  %p966_p8 = scmp.ne.s32.totalorder %s960_s21, 0 }
  0x2f   : > { %p824_p6 = por %p47_p4, %p46_p2  ;;  %s36_s27 = ssub.s32 %s700_s16, %s980_s28 }
  0x30   : > { %p830_p10 = por %p966_p8, %p46_p2  ;;  %p503_p12 = scmp.lt.s32.totalorder %s704_s17, 2 }
  0x31   : > { %p37_p11 = scmp.eq.s32.totalorder %s36_s27, 0  ;;  %s177_s26 = sand.u32 1, %s692_s14  }
  0x32   : > { %s448_s4 = sshll.u32 %s177_s26, 3  ;;  %s449_s6 = sshll.u32 %s700_s16, 7 }
  0x33   : > { %s839_s5 = scalar_select %p37_p11, %s692_s14, %s39_s25  }
  0x34   : > { %s845_s9 = scalar_lea.hbm %s951_s0, %s449_s6  ;;  %s181_s21 = scalar_lea.vmem [#allocation2], %s448_s4 }
  0x35   : > { %s188_s10 = sshll.u32 %s181_s21, 4  ;;  %p851_p13 = pnand %p503_p12, %p824_p6  ;;  %s847_s10 = int_to_ptr.vmem [resolvable:$true] %s188_s10 }
  0x36   : > { %s178_s18 = scalar_lea.sflag [#allocation3], %s177_s26  ;;  %s588_s19 = scalar_lea.hbm %s845_s9, 128 }
  0x37   : > { %p589_p0 = scmp.ne.s32.totalorder %s845_s9, %s588_s19  ;;  %p590_p3 = pneg %p851_p13 }
  0x38   : > { %s593_s4 = scalar_lea.hbm %s951_s0, 256  ;;  %p594_p9 = scmp.lt.u32.totalorder %s845_s9, %s951_s0 }
  0x39   : > { %p591_p5 = pnand %p590_p3, %p589_p0  ;;  %p595_p1 = scmp.lt.u32.totalorder %s593_s4, %s588_s19 }
  0x3a   : > { %p597_p4 = scmp.lt.u32.totalorder %s588_s19, %s845_s9 }
  0x3b   : > { %p592_p7 = pneg %p591_p5  ;;  %p596_p2 = por %p595_p1, %p594_p9 }
  0x3d   : > { %p598_p6 = por %p597_p4, %p596_p2 }
  0x3f   : > { %p599_p8 = pnand %p598_p6, %p592_p7 }
  0x41   : > { %602 = shalt.err (!%p599_p8)
}
  0x42   : > { %s603_s26 = scalar_lea.vmem %s847_s10, 128  ;;  %s709_s7 = smov [#allocation2]  }
  0x43   : > { %p604_p12 = scmp.ne.s32.totalorder %s847_s10, %s603_s26  ;;  %s608_s8 = sshll.u32 %s709_s7, 4  ;;  %s609_s8 = int_to_ptr.vmem [resolvable:$false] %s608_s8 }
  0x44   : > { %s610_s21 = scalar_lea.vmem %s609_s8, 256  ;;  %p611_p5 = scmp.lt.s32.totalorder %s847_s10, %s609_s8 }
  0x45   : > { %p606_p11 = pnand %p604_p12, %p590_p3  ;;  %p612_p9 = scmp.lt.s32.totalorder %s610_s21, %s603_s26 }
  0x47   : > { %p607_p0 = pneg %p606_p11  ;;  %p613_p1 = por %p612_p9, %p611_p5 }
  0x49   : > { %p614_p2 = pnand %p613_p1, %p607_p0 }
  0x4b   : > { %617 = shalt.err (!%p614_p2)
}
  0x4c   : > { %497 = dma.hbm_to_vmem [thread:$0]  (!%p851_p13), %s845_s9, 128, %s847_s10, %s178_s18  }
  0x4d   : > { %p969_p7 = scmp.ne.s32.totalorder %s963_s24, 0 }
  0x4e   : > { %s883_s19 = sand.u32 (!%p969_p7), 1, %s688_s13   ;;  %p970_p3 = scmp.ne.s32.totalorder (!%p969_p7), %s961_s22, 0 }
  0x4f   : > { %197 = sbr.rel (%p969_p7) target bundleno = 329 (0x149), region = 32  ;;  %s451_s25 = sshll.u32 (!%p969_p7), %s883_s19, 3 }
  0x50   : > { %s200_s27 = scalar_lea.sflag (!%p969_p7), [#allocation3], %s883_s19  ;;  %s203_s4 = scalar_lea.vmem (!%p969_p7), [#allocation2], %s451_s25 }
  0x56   : > { %671 = dma.done.wait (%p970_p3), %s200_s27, 128  }
  0x57   : > { %673 = vsyncadd (%p970_p3), %s200_s27, 4294967168  ;;  %p971_p4 = scmp.ne.s32.totalorder %s959_s20, 0 }
  0x59   : > { %675 = dma.done.wait (%p971_p4), [#allocation6], 512  }
  0x5a   : > { %677 = vsyncadd (%p971_p4), [#allocation6], 4294966784  ;;  %v710_v0 = vmov 0.0|0.0   ;;  %vm711_vm0 = vmmov 0   ;;  %v712_v1 = vmov 0.0   ;;  %v237_v2 = vld [vmem:[#allocation5] sm:$0xff] }
  0x5b   : > { %476 = vmatprep.subr.bf16.mxu0 %v710_v0  ;;  %473 = vmatprep.mubr.msk.f32.mxu0 %vm711_vm0, %v712_v1  ;;  %v238_v3 = vld [vmem:[#allocation5 + $0x8] sm:$0xff]  ;;  %v239_v4 = vld [vmem:[#allocation5 + $0x10] sm:$0xff]  ;;  %v240_v6 = vld [vmem:[#allocation5 + $0x18] sm:$0xff]  ;;  %vm248_vm1 = vcmask 261120   ;;  %s457_s24 = sshll.u32 %s696_s15, 7  ;;  %s232_s9 = scalar_lea.vmem [#allocation7], %s451_s25 }
  0x5c   : > { %v477_v5 = vpack.c.bf16 %v238_v3, %v237_v2  ;;  %v480_v7 = vpack.c.bf16 %v240_v6, %v239_v4  ;;  %v236_v8 = vld [vmem:[%s203_s4] sm:$0xff]  ;;  %s339_s10 = sshll.u32 %s232_s9, 4  ;;  %vm322_vm2 = vcmask 523264   ;;  %s902_s29 = scalar_lea.hbm %s954_s3, %s457_s24  ;;  %s904_s10 = int_to_ptr.vmem [resolvable:$true] %s339_s10 }
  0x5d   : > { %v454_v9 = vld [vmem:[%s953_s2] ss:$0 sm:$0xff]  ;;  %s325_s6 = scalar_lea.sflag [#allocation4], %s883_s19  ;;  %s618_s26 = scalar_lea.vmem %s904_s10, 128 }
  0x5e   : > { %478 = vmatpush3.bf16.msra.mxu0 %v477_v5  ;;  %p619_p13 = scmp.ne.s32.totalorder %s904_s10, %s618_s26  ;;  %s713_s15 = smov [#allocation7]  }
  0x5f   : > { %479 = vmatprep.subr.bf16.mxu0 %v710_v0  ;;  %s622_s7 = sshll.u32 %s713_s15, 4  ;;  %s623_s7 = int_to_ptr.vmem [resolvable:$false] %s622_s7 }
  0x60   : > { %p620_p6 = pnand %p619_p13, %p830_p10  ;;  %s624_s8 = scalar_lea.vmem %s623_s7, 256 }
  0x61   : > { %p625_p12 = scmp.lt.s32.totalorder %s904_s10, %s623_s7  ;;  %p626_p11 = scmp.lt.s32.totalorder %s624_s8, %s618_s26 }
  0x62   : > { %481 = vmatpush3.bf16.msra.mxu0 %v480_v7  ;;  %p621_p8 = pneg %p620_p6 }
  0x63   : > { %p627_p0 = por %p626_p11, %p625_p12 }
  0x65   : > { %474 = vmatmul.mubr.msk.f32.vlgmr.msra.gmra.mrb[0].mxu0 %vm248_vm1, %v236_v8  ;;  %p628_p5 = pnand %p627_p0, %p621_p8 }
 0x138   : > { %v318_v10 = vpop.f32.mrb[0].mxu0 }
 0x139   : > { %v319_v11 = vadd.f32 %v454_v9, %v318_v10  ;;  %v475_v12 = vpop.f32.mrb[1].mxu0 }
 0x13b   : > { %323 = vst.msk [vmem:[%s232_s9] sm:$0xff] %vm322_vm2, %v319_v11 }
 0x13c   : > { %631 = shalt.err (!%p628_p5)
}
 0x13d   : > { %s632_s21 = scalar_lea.hbm %s902_s29, 128  ;;  %s636_s27 = scalar_lea.hbm %s954_s3, 256 }
 0x13e   : > { %p633_p9 = scmp.ne.s32.totalorder %s902_s29, %s632_s21  ;;  %p637_p7 = scmp.lt.u32.totalorder %s902_s29, %s954_s3 }
 0x13f   : > { %p638_p3 = scmp.lt.u32.totalorder %s636_s27, %s632_s21  ;;  %p640_p13 = scmp.lt.u32.totalorder %s632_s21, %s902_s29 }
 0x140   : > { %p634_p1 = pnand %p633_p9, %p830_p10 }
 0x141   : > { %p639_p4 = por %p638_p3, %p637_p7 }
 0x142   : > { %p635_p2 = pneg %p634_p1 }
 0x143   : > { %p641_p6 = por %p640_p13, %p639_p4 }
 0x145   : > { %p642_p8 = pnand %p641_p6, %p635_p2 }
 0x147   : > { %645 = shalt.err (!%p642_p8)
}
 0x148   : > { %488 = dma.vmem_to_hbm [thread:$0]  (%p830_p10), %s904_s10, 128, %s902_s29, %s325_s6  }
 0x149 PF: > { %s351_s22 = sand.u32 1, %s684_s12   ;;  %p972_p12 = scmp.ne.s32.totalorder %s962_s23, 0 }
 0x14a   : > { %p973_p11 = scmp.ge.s32.totalorder %s704_s17, 2  ;;  %s352_s24 = scalar_lea.sflag [#allocation4], %s351_s22 }
 0x14c   : > { %p499_p0 = pnand %p973_p11, %p972_p12 }
 0x14e   : > { %679 = dma.done.wait (!%p499_p0), %s352_s24, 128  }
 0x14f   : > { %681 = vsyncadd (!%p499_p0), %s352_s24, 4294967168  ;;  %s20_s17 = sadd.s32 1, %s704_s17   ;;  %s974_s12 = smov %s688_s13 }
 0x150   : > { %p17_p5 = scmp.ge.s32.totalorder %s20_s17, 4   ;;  %s975_s13 = smov %s692_s14 }
 0x151   : > { %s976_s14 = smov %s839_s5  ;;  %s977_s15 = smov %s700_s16 }
 0x152   : > { %s978_s16 = smov %s980_s28  ;;  %19 = sbr.rel (!%p17_p5) target bundleno = 7 (0x7), region = 85 }
 0x159   :  { %357 = vsyncpa [#allocation3], 1 }
 0x15a   :  { %359 = vsyncpa [#allocation3 + $0x1], 1 }
 0x15b   :  { %360 = vsyncpa [#allocation6], 1 }
 0x15c   :  { %361 = vsyncpa [#allocation4], 1 }
 0x15d   :  { %363 = vsyncpa [#allocation4 + $0x1], 1 }

</bundles_post_ra>
